<compile_context>
chip_gen: v7x
topology: tpu7x:2x2x1
jax: 0.10.0
libtpu: 0.0.40
codegen_flags: <defaults>
</compile_context>

<pallas_src>
import functools

import jax
import jax.numpy as jnp
from jax.experimental import pallas as pl
from jax.experimental.pallas import tpu as pltpu


def _round_up(x, m):
    return ((x + m - 1) // m) * m


def _attn_kernel(q_ref, k_ref, v_ref, b_ref, o_ref, *, scale):
    # q_ref: (nb, tt, C)  query rows (original dtype)
    # k_ref: (nb, C, S)   keys, bf16, resident across the T grid axis
    # v_ref: (nb, S, C)   values (pre-transposed), bf16, resident across T
    # b_ref: (nb, 1, S)   f32 additive mask bias (0 = keep, -inf = masked)
    # o_ref: (nb, tt, C)  output tile (C on lanes)
    q = (q_ref[...].astype(jnp.float32) * scale).astype(jnp.bfloat16)
    logits = jax.lax.dot_general(
        q, k_ref[...],
        dimension_numbers=(((2,), (1,)), ((0,), (0,))),
        preferred_element_type=jnp.float32)                       # (nb, tt, S)
    logits = logits + b_ref[...]                                   # additive mask
    m = jnp.max(logits, axis=-1, keepdims=True)                    # (nb, tt, 1)
    p = jnp.exp(logits - m)
    l = jnp.sum(p, axis=-1, keepdims=True)                         # (nb, tt, 1)
    g = jax.lax.dot_general(
        p.astype(jnp.bfloat16), v_ref[...],
        dimension_numbers=(((2,), (1,)), ((0,), (0,))),
        preferred_element_type=jnp.float32)                        # (nb, tt, C)
    # Deferred normalization: one EUP reciprocal + tt*C muls instead of a
    # tt*S divide over the full weight matrix.
    g = g * pl.reciprocal(l, approx=True)
    o_ref[...] = g.astype(o_ref.dtype)


def _default_tiles(N, C, T, S, q_bytes, o_bytes):
    """Pick (batch_tile, t_tile) keeping the resident VMEM footprint bounded."""
    t8 = _round_up(max(T, 1), 8)
    single_t = t8 <= 256
    tt = t8 if single_t else 256
    nb = max(1, min(N, 8))

    def footprint(nb_, tt_):
        kv = 2 * 2 * nb_ * C * S * 2            # K + V, double-buffered, bf16
        q = 2 * nb_ * tt_ * C * q_bytes         # query tiles (double-buffered)
        o = 2 * nb_ * tt_ * C * o_bytes         # output tiles
        b = 2 * nb_ * S * 4                     # mask bias
        inter = 3 * nb_ * tt_ * S * 4           # logits / p / spill headroom
        return kv + q + o + b + inter

    budget = 40 * 1024 * 1024                   # safe under v7x's 64 MiB VMEM
    while nb > 1 and footprint(nb, tt) > budget:
        nb //= 2
    while (not single_t) and tt > 128 and footprint(nb, tt) > budget:
        tt -= 128
    # TODO(synk): if C*S is so large that nb=1, tt=128 still exceeds the budget,
    # add an S grid axis with flash-style online softmax instead of keeping the
    # full (C,S)/(S,C) K/V slabs resident.
    return nb, tt


def dot_product_attention(query, key, value, mask=None, *, dim_model=None,
                          batch_tile=None, t_tile=None):
    """query: (N, C, T); key/value: (N, C, S); mask: (N, S) bool (True = masked).

    Returns the glimpse of shape (N, C, T), matching DotProductAttentionLayer.
    """
    N, C, T = query.shape
    Nk, Ck, S = key.shape
    assert (Nk, Ck) == (N, C) and value.shape == (N, C, S)
    scale = float(dim_model) ** -0.5 if dim_model is not None else 1.0

    nb, tt = _default_tiles(N, C, T, S, query.dtype.itemsize, query.dtype.itemsize)
    if batch_tile is not None:
        nb = max(1, min(batch_tile, N))
    if t_tile is not None:
        tt = _round_up(t_tile, 8)
    N_pad = _round_up(N, nb)
    T_pad = _round_up(T, tt)

    # Wrapper-side layout/dtype plumbing (one pass each): row-major query slabs,
    # bf16 keys, bf16 pre-transposed values, f32 additive mask bias.
    q_t = jnp.transpose(query, (0, 2, 1))                          # (N, T, C)
    k_b = key.astype(jnp.bfloat16)                                 # (N, C, S)
    v_t = jnp.transpose(value, (0, 2, 1)).astype(jnp.bfloat16)     # (N, S, C)
    if mask is None:
        bias = jnp.zeros((N, 1, S), jnp.float32)
    else:
        assert mask.shape == (N, S)
        bias = jnp.where(mask, -jnp.inf, 0.0).astype(jnp.float32).reshape(N, 1, S)

    if T_pad != T:
        q_t = jnp.pad(q_t, ((0, 0), (0, T_pad - T), (0, 0)))
    if N_pad != N:
        pad_n = ((0, N_pad - N), (0, 0), (0, 0))
        q_t = jnp.pad(q_t, pad_n)
        k_b = jnp.pad(k_b, pad_n)
        v_t = jnp.pad(v_t, pad_n)
        bias = jnp.pad(bias, pad_n)                                # 0 = valid

    kernel = functools.partial(_attn_kernel, scale=scale)
    out = pl.pallas_call(
        kernel,
        out_shape=jax.ShapeDtypeStruct((N_pad, T_pad, C), query.dtype),
        grid_spec=pltpu.PrefetchScalarGridSpec(
            num_scalar_prefetch=0,
            grid=(N_pad // nb, T_pad // tt),
            in_specs=[
                pl.BlockSpec((nb, tt, C), lambda b, t: (b, t, 0)),  # query rows
                pl.BlockSpec((nb, C, S), lambda b, t: (b, 0, 0)),   # keys (resident)
                pl.BlockSpec((nb, S, C), lambda b, t: (b, 0, 0)),   # values (resident)
                pl.BlockSpec((nb, 1, S), lambda b, t: (b, 0, 0)),   # mask bias
            ],
            out_specs=pl.BlockSpec((nb, tt, C), lambda b, t: (b, t, 0)),
        ),
        compiler_params=pltpu.CompilerParams(
            # T is the inner ("arbitrary") axis so K/V stay resident per batch
            # tile; megacore (v7x) shards across batch tiles only.
            dimension_semantics=("parallel", "arbitrary"),
            vmem_limit_bytes=56 * 1024 * 1024,
        ),
    )(q_t, k_b, v_t, bias)

    out = out[:N, :T, :]                         # drop batch/T padding
    return jnp.transpose(out, (0, 2, 1))         # (N, C, T)


def _reference(query, key, value, mask, dim_model):
    # Pure-JAX mirror of the PyTorch forward (f32 throughout).
    scale = float(dim_model) ** -0.5 if dim_model is not None else 1.0
    q = jnp.transpose(query, (0, 2, 1))                      # (N, T, C)
    logits = jnp.einsum("ntc,ncs->nts", q, key) * scale      # (N, T, S)
    if mask is not None:
        logits = jnp.where(mask[:, None, :], -jnp.inf, logits)
    weights = jax.nn.softmax(logits, axis=2)
    v = jnp.transpose(value, (0, 2, 1))                      # (N, S, C)
    glimpse = jnp.einsum("nts,nsc->ntc", weights, v)         # (N, T, C)
    return jnp.transpose(glimpse, (0, 2, 1))                 # (N, C, T)


if __name__ == "__main__":
    rng = jax.random.PRNGKey(0)
    kq, kk, kv = jax.random.split(rng, 3)

    # batch=2, dim_model(C)=32, query len(T)=8, key/value len(S)=16
    N, C, T, S = 2, 32, 8, 16
    query = jax.random.normal(kq, (N, C, T), jnp.float32)
    key = jax.random.normal(kk, (N, C, S), jnp.float32)
    value = jax.random.normal(kv, (N, C, S), jnp.float32)
    # Padding mask: batch 0 attends everywhere, batch 1 masks its last 4 keys.
    valid = jnp.array([S, S - 4])
    mask = jnp.arange(S)[None, :] >= valid[:, None]          # (N, S) bool

    out = dot_product_attention(query, key, value, mask, dim_model=C)
    out = jax.block_until_ready(out)

    ref = _reference(query, key, value, mask, C)
    assert out.shape == (N, C, T)
    # bf16 matmuls + approximate reciprocal -> relaxed tolerance vs f32 reference.
    assert jnp.allclose(out, ref, atol=5e-2, rtol=5e-2), "mismatch vs reference"

    print("KERNEL_OK")
</pallas_src>

<mosaic_0001>
module attributes {stable_mosaic.version = 11 : i64} {
  func.func @_attn_kernel(%arg0: i32, %arg1: i32, %arg2: memref<2x8x32xf32, #tpu.memory_space<vmem>>, %arg3: memref<2x32x16xbf16, #tpu.memory_space<vmem>>, %arg4: memref<2x16x32xbf16, #tpu.memory_space<vmem>>, %arg5: memref<2x1x16xf32, #tpu.memory_space<vmem>>, %arg6: memref<2x8x32xf32, #tpu.memory_space<vmem>>) attributes {dimension_semantics = [#tpu.dimension_semantics<parallel>, #tpu.dimension_semantics<arbitrary>], iteration_bounds = array<i64: 1, 1>, scalar_prefetch = 0 : i64, scratch_operands = 0 : i64, tpu.core_type = #tpu.core_type<tc>, window_params = [{transform_indices = @transform_0, window_bounds = array<i64: 2, 8, 32>}, {transform_indices = @transform_1, window_bounds = array<i64: 2, 32, 16>}, {transform_indices = @transform_2, window_bounds = array<i64: 2, 16, 32>}, {transform_indices = @transform_3, window_bounds = array<i64: 2, 1, 16>}, {transform_indices = @transform_4, window_bounds = array<i64: 2, 8, 32>}]} {
    %c0 = arith.constant 0 : index
    %c0_0 = arith.constant 0 : index
    %c0_1 = arith.constant 0 : index
    %0 = vector.load %arg2[%c0, %c0_0, %c0_1] : memref<2x8x32xf32, #tpu.memory_space<vmem>>, vector<2x8x32xf32>
    %cst = arith.constant 0.176776692 : f32
    %1 = vector.broadcast %cst : f32 to vector<2x8x32xf32>
    %2 = arith.mulf %0, %1 : vector<2x8x32xf32>
    %3 = arith.truncf %2 : vector<2x8x32xf32> to vector<2x8x32xbf16>
    %c0_2 = arith.constant 0 : index
    %c0_3 = arith.constant 0 : index
    %c0_4 = arith.constant 0 : index
    %4 = vector.load %arg3[%c0_2, %c0_3, %c0_4] : memref<2x32x16xbf16, #tpu.memory_space<vmem>>, vector<2x32x16xbf16>
    %cst_5 = arith.constant dense<0.000000e+00> : vector<2x8x16xf32>
    %5 = tpu.matmul %3, %4, %cst_5 {dimension_numbers = #tpu.dot_dimension_numbers<[2], [1], [1], [2], [0, 0, 0, 1, 1, 2], [0], [0]>} : vector<2x8x32xbf16>, vector<2x32x16xbf16>, vector<2x8x16xf32> -> vector<2x8x16xf32>
    %c0_6 = arith.constant 0 : index
    %c0_7 = arith.constant 0 : index
    %c0_8 = arith.constant 0 : index
    %6 = vector.load %arg5[%c0_6, %c0_7, %c0_8] : memref<2x1x16xf32, #tpu.memory_space<vmem>>, vector<2x1x16xf32>
    %7 = vector.broadcast %6 : vector<2x1x16xf32> to vector<2x8x16xf32>
    %8 = arith.addf %5, %7 : vector<2x8x16xf32>
    %cst_9 = arith.constant dense<0xFF800000> : vector<2x8xf32>
    %9 = vector.multi_reduction <maximumf>, %8, %cst_9 [2] : vector<2x8x16xf32> to vector<2x8xf32>
    %10 = vector.shape_cast %9 : vector<2x8xf32> to vector<2x8x1xf32>
    %11 = vector.broadcast %10 : vector<2x8x1xf32> to vector<2x8x16xf32>
    %12 = arith.subf %8, %11 : vector<2x8x16xf32>
    %13 = math.exp %12 : vector<2x8x16xf32>
    %cst_10 = arith.constant dense<0.000000e+00> : vector<2x8xf32>
    %14 = vector.multi_reduction <add>, %13, %cst_10 [2] : vector<2x8x16xf32> to vector<2x8xf32>
    %15 = vector.shape_cast %14 : vector<2x8xf32> to vector<2x8x1xf32>
    %16 = arith.truncf %13 : vector<2x8x16xf32> to vector<2x8x16xbf16>
    %c0_11 = arith.constant 0 : index
    %c0_12 = arith.constant 0 : index
    %c0_13 = arith.constant 0 : index
    %17 = vector.load %arg4[%c0_11, %c0_12, %c0_13] : memref<2x16x32xbf16, #tpu.memory_space<vmem>>, vector<2x16x32xbf16>
    %cst_14 = arith.constant dense<0.000000e+00> : vector<2x8x32xf32>
    %18 = tpu.matmul %16, %17, %cst_14 {dimension_numbers = #tpu.dot_dimension_numbers<[2], [1], [1], [2], [0, 0, 0, 1, 1, 2], [0], [0]>} : vector<2x8x16xbf16>, vector<2x16x32xbf16>, vector<2x8x32xf32> -> vector<2x8x32xf32>
    %19 = tpu.reciprocal %15 {approx = true} : vector<2x8x1xf32> -> vector<2x8x1xf32>
    %20 = vector.broadcast %19 : vector<2x8x1xf32> to vector<2x8x32xf32>
    %21 = arith.mulf %18, %20 : vector<2x8x32xf32>
    %c0_15 = arith.constant 0 : index
    %c0_16 = arith.constant 0 : index
    %c0_17 = arith.constant 0 : index
    %22 = vector.load %arg6[%c0_15, %c0_16, %c0_17] : memref<2x8x32xf32, #tpu.memory_space<vmem>>, vector<2x8x32xf32>
    tpu.vector_store %arg6[%c0_15, %c0_16, %c0_17], %21 {strides = array<i32>} : memref<2x8x32xf32, #tpu.memory_space<vmem>>, vector<2x8x32xf32>,
    return
  }
  func.func @transform_0(%arg0: i32, %arg1: i32) -> (i32, i32, i32) {
    %c0_i32 = arith.constant 0 : i32
    %c0_i32_0 = arith.constant 0 : i32
    return %arg0, %arg1, %c0_i32 : i32, i32, i32
  }
  func.func @transform_1(%arg0: i32, %arg1: i32) -> (i32, i32, i32) {
    %c0_i32 = arith.constant 0 : i32
    %c0_i32_0 = arith.constant 0 : i32
    %c0_i32_1 = arith.constant 0 : i32
    return %arg0, %c0_i32, %c0_i32_0 : i32, i32, i32
  }
  func.func @transform_2(%arg0: i32, %arg1: i32) -> (i32, i32, i32) {
    %c0_i32 = arith.constant 0 : i32
    %c0_i32_0 = arith.constant 0 : i32
    %c0_i32_1 = arith.constant 0 : i32
    return %arg0, %c0_i32, %c0_i32_0 : i32, i32, i32
  }
  func.func @transform_3(%arg0: i32, %arg1: i32) -> (i32, i32, i32) {
    %c0_i32 = arith.constant 0 : i32
    %c0_i32_0 = arith.constant 0 : i32
    %c0_i32_1 = arith.constant 0 : i32
    return %arg0, %c0_i32, %c0_i32_0 : i32, i32, i32
  }
  func.func @transform_4(%arg0: i32, %arg1: i32) -> (i32, i32, i32) {
    %c0_i32 = arith.constant 0 : i32
    %c0_i32_0 = arith.constant 0 : i32
    return %arg0, %arg1, %c0_i32 : i32, i32, i32
  }
}

</mosaic_0001>

<bundles_post_ra>
// kernel: tpu_custom_call.1
= control target key start
LH: loop header
LB: loop body
LE: loop exit
PB: predicated region body
PF: predicated region fallthrough
CT: control target
= control target key end

     0   :  { %v396_v1 = vmov 0.0   ;;  %vm397_vm0 = vmmov 0   ;;  %vm59_vm1 = vcmask 261120   ;;  %s482_s0 = inlined_call_operand.vmem [shape: f32[2,8,32], index: 0, kind: input, shape index: {}]   ;;  %s483_s1 = inlined_call_operand.vmem [shape: bf16[2,32,16], index: 1, kind: input, shape index: {}]   ;;  %s484_s2 = inlined_call_operand.vmem [shape: bf16[2,16,32], index: 2, kind: input, shape index: {}]   ;;  %s485_s3 = inlined_call_operand.vmem [shape: f32[2,1,16], index: 3, kind: input, shape index: {}]   ;;  %s486_s4 = inlined_call_operand.hbm [shape: f32[2,8,32], index: 4, kind: output, shape index: {}]  }
   0x1   :  { %v358_v0 = vld [vmem:[%s483_s1] sm:$0xff]   ;;  %325 = vmatprep.subr.bf16.mxu0 %v396_v1  ;;  %333 = vmatprep.subr.bf16.mxu1 %v396_v1  ;;  %v359_v2 = vld [vmem:[%s483_s1 + $0x10] sm:$0xff]   ;;  %v360_v3 = vld [vmem:[%s483_s1 + $0x8] sm:$0xff]  }
   0x2   :  { %326 = vmatpush3.bf16.msra.mxu0 %v358_v0  ;;  %329 = vmatprep.mubr.msk.bf16.mxu0 %vm397_vm0, %v396_v1  ;;  %v361_v4 = vld [vmem:[%s483_s1 + $0x18] sm:$0xff]   ;;  %v19_v5 = vld [vmem:[%s482_s0] sm:$0xff]  ;;  %v20_v6 = vld [vmem:[%s482_s0 + $0x8] sm:$0xff] }
   0x3   :  { %334 = vmatpush3.bf16.msra.mxu1 %v359_v2  ;;  %327 = vmatprep.subr.bf16.mxu0 %v396_v1  ;;  %v21_v7 = vmul.f32 0.17677669, %v19_v5  ;;  %v22_v8 = vmul.f32 0.17677669, %v20_v6 }
   0x4   :  { %335 = vmatprep.subr.bf16.mxu1 %v396_v1  ;;  %337 = vmatprep.mubr.msk.bf16.mxu1 %vm397_vm0, %v396_v1 }
   0x5   :  { %v23_v9 = vpack.c.bf16 %v21_v7, %v21_v7  ;;  %v24_v10 = vpack.c.bf16 %v22_v8, %v22_v8 }
   0x6   :  { %328 = vmatpush3.bf16.msra.mxu0 %v360_v3 }
   0x7   :  { %336 = vmatpush3.bf16.msra.mxu1 %v361_v4  ;;  %341 = vmatprep.subr.bf16.mxu0 %v396_v1 }
   0x8   :  { %9 = vsyncpa [#allocation3], 0  ;;  %347 = vmatprep.subr.bf16.mxu1 %v396_v1  ;;  %v303_v11 = vld [vmem:[%s485_s3] ss:$0 sm:$0xff]  ;;  %v304_v12 = vld [vmem:[%s485_s3 + $0x1] ss:$0 sm:$0xff] }
   0x9   :  { %330 = vmatmul.mubr.msk.bf16.vlgmr.msra.gmra.mrb[0].mxu0 %vm59_vm1, %v23_v9  ;;  %vm158_vm2 = vcmask 130048   ;;  %v362_v25 = vld [vmem:[%s484_s2] sm:$0xff]   ;;  %v363_v26 = vld [vmem:[%s484_s2 + $0x8] sm:$0xff]   ;;  %s398_s2 = smov [#allocation2]  }
   0xa   :  { %338 = vmatmul.mubr.msk.bf16.vlgmr.msra.gmra.mrb[0].mxu1 %vm59_vm1, %v24_v10  ;;  %343 = vmatprep.mubr.msk.bf16.mxu0 %vm397_vm0, %v396_v1  ;;  %s292_s6 = sshll.u32 %s398_s2, 4  ;;  %s293_s6 = int_to_ptr.vmem [resolvable:$true] %s292_s6 }
   0xb   :  { %349 = vmatprep.mubr.msk.bf16.mxu1 %vm397_vm0, %v396_v1  ;;  %342 = vmatpush3.bf16.msra.mxu0 %v362_v25  ;;  %s372_s7 = scalar_lea.vmem %s293_s6, 256  ;;  %p377_p1 = scmp.lt.s32.totalorder %s293_s6, %s293_s6 }
   0xc   :  { %348 = vmatpush3.bf16.msra.mxu1 %v363_v26  ;;  %p373_p0 = scmp.ne.s32.totalorder %s293_s6, %s372_s7  ;;  %p378_p2 = scmp.lt.s32.totalorder %s372_s7, %s372_s7 }
   0xe   :  { %p379_p3 = por %p378_p2, %p377_p1 }
  0x10   :  { %p380_p4 = pnand %p379_p3, %p373_p0 }
  0xdc   :  { %v97_v13 = vpop.f32.mrb[0].mxu0 }
  0xdd   :  { %v98_v14 = vadd.f32 %v303_v11, %v97_v13  ;;  %v331_v15 = vpop.f32.mrb[1].mxu0  ;;  %v152_v16 = vpop.f32.mrb[0].mxu1 }
  0xde   :  { %v153_v17 = vadd.f32 %v304_v12, %v152_v16  ;;  %v100_v18 = vpop.f32.mrb[2].mxu0  ;;  %v339_v19 = vpop.f32.mrb[1].mxu1 }
  0xdf   :  { %v332_v20 = vpop.f32.mrb[3].mxu0  ;;  %v155_v21 = vpop.f32.mrb[2].mxu1  ;;  %v159_v22 = vsel %vm158_vm2, %v98_v14, -inf }
  0xe0   :  { %v340_v23 = vpop.f32.mrb[3].mxu1  ;;  %160 = vmax.xlane.f32.xlu0 %v159_v22  ;;  %v162_v24 = vsel %vm158_vm2, %v153_v17, -inf }
  0xe4   :  { %163 = vmax.xlane.f32.xlu0 %v162_v24 }
 0x16d   :  { %v161_v27 = vpop.xlane.xlu0 %160 }
 0x16e   :  { %v165_v28 = vsub.f32 %v98_v14, %v161_v27 }
 0x170   :  { %v167_v29 = vmul.f32 1.442695, %v165_v28 }
 0x171   :  { %v164_v30 = vpop.xlane.xlu0 %163 }
 0x172   :  { %364 = vpow2.f32 %v167_v29  ;;  %v166_v31 = vsub.f32 %v153_v17, %v164_v30 }
 0x174   :  { %v169_v32 = vmul.f32 1.442695, %v166_v31 }
 0x176   :  { %366 = vpow2.f32 %v169_v32 }
 0x17c   :  { %v365_v33 = vpop.eup %364 }
 0x17d   :  { %v171_v34 = vsel %vm158_vm2, %v365_v33, 0.0  ;;  %v177_v35 = vpack.c.bf16 %v365_v33, %v365_v33 }
 0x17e   :  { %172 = vadd.xlane.f32.xlu1 %v171_v34 }
 0x17f   :  { %344 = vmatmul.mubr.msk.bf16.vlgmr.msra.gmra.mrb[4].mxu0 %vm158_vm2, %v177_v35 }
 0x180   :  { %v367_v36 = vpop.eup %366 }
 0x181   :  { %v174_v37 = vsel %vm158_vm2, %v367_v36, 0.0  ;;  %v178_v38 = vpack.c.bf16 %v367_v36, %v367_v36 }
 0x182   :  { %175 = vadd.xlane.f32.xlu1 %v174_v37 }
 0x183   :  { %350 = vmatmul.mubr.msk.bf16.vlgmr.msra.gmra.mrb[4].mxu1 %vm158_vm2, %v178_v38 }
 0x20b   :  { %v173_v39 = vpop.xlane.xlu1 %172 }
 0x20c   :  { %368 = vrcp.f32 %v173_v39 }
 0x20f   :  { %v176_v40 = vpop.xlane.xlu1 %175 }
 0x210   :  { %370 = vrcp.f32 %v176_v40 }
 0x216   :  { %v369_v41 = vpop.eup %368 }
 0x21a   :  { %v371_v47 = vpop.eup %370 }
 0x252   :  { %v226_v42 = vpop.f32.mrb[4].mxu0 }
 0x253   :  { %v283_v43 = vmul.f32 %v369_v41, %v226_v42  ;;  %v345_v44 = vpop.f32.mrb[5].mxu0 }
 0x254   :  { %v229_v45 = vpop.f32.mrb[6].mxu0 }
 0x255   :  { %285 = vst.msk [vmem:[#allocation2] sm:$0xff] %vm59_vm1, %v283_v43  ;;  %v346_v46 = vpop.f32.mrb[7].mxu0 }
 0x256   :  { %v275_v48 = vpop.f32.mrb[4].mxu1 }
 0x257   :  { %v284_v49 = vmul.f32 %v371_v47, %v275_v48  ;;  %v351_v50 = vpop.f32.mrb[5].mxu1 }
 0x258   :  { %v278_v51 = vpop.f32.mrb[6].mxu1 }
 0x259   :  { %286 = vst.msk [vmem:[#allocation2 + $0x8] sm:$0xff] %vm59_vm1, %v284_v49  ;;  %v352_v52 = vpop.f32.mrb[7].mxu1 }
 0x25a   :  { %383 = shalt.err (!%p380_p4)
}
 0x25b   :  { %s384_s10 = scalar_lea.hbm %s486_s4, 256 }
 0x25c   :  { %p385_p5 = scmp.ne.s32.totalorder %s486_s4, %s384_s10  ;;  %p388_p6 = scmp.lt.u32.totalorder %s384_s10, %s486_s4 }
 0x25e   :  { %p390_p7 = pnand %p388_p6, %p385_p5 }
 0x260   :  { %393 = shalt.err (!%p390_p7)
}
 0x261   :  { %s399_s15 = smov 128   ;;  %s400_s16 = smov 8  }
 0x262   :  { %298 = dma.vmem_to_hbm [thread:$0]  %s293_s6, 256, %s486_s4, [#allocation3], %s399_s15, %s399_s15, %s400_s16  }
 0x263   :  { %394 = dma.done.wait [#allocation3], 256  }
 0x264   :  { %395 = vsyncadd [#allocation3], 4294967040 }
 0x265   :  { %302 = vsyncpa [#allocation3], 1 }

</bundles_post_ra>
